<compile_context>
chip_gen: v7x
topology: tpu7x:2x2x1
jax: 0.10.0
libtpu: 0.0.40
codegen_flags: <defaults>
</compile_context>

<pallas_src>
import math
import functools

import jax
import jax.numpy as jnp
import numpy as np
from jax.experimental import pallas as pl
from jax.experimental.pallas import tpu as pltpu


# ------------------------------- Pallas kernel -------------------------------

def _rmsnorm_kernel(x_ref, w_ref, o_ref, *, eps):
    # One (tm, H) row-tile per grid step. Compute in f32 (matches torch x.float()).
    x = x_ref[...].astype(jnp.float32)
    var = jnp.mean(x * x, axis=-1, keepdims=True)
    normed = x * jax.lax.rsqrt(var + eps)
    w = w_ref[...].astype(jnp.float32)            # (1, H), broadcasts over rows
    o_ref[...] = (normed * (1.0 + w)).astype(o_ref.dtype)


# ------------------------------ tile selection --------------------------------

def _vmem_capacity_bytes():
    try:
        return int(pltpu.get_tpu_info().vmem_capacity_bytes)
    except Exception:
        return 64 << 20          # v7x-safe fallback (smallest current generation)


def _pick_block_rows(M, H, dtype, vmem_cap):
    """Largest lane-dense row tile that keeps the double-buffered working set in VMEM."""
    in_bytes = jnp.dtype(dtype).itemsize
    sub = max(8, 32 // in_bytes)                  # sublane packing: 8 f32, 16 bf16, 32 int8/fp8
    # Per-row VMEM: 2x input + 2x output pipeline buffers + ~2 f32-row intermediates.
    per_row = H * (2 * in_bytes + 2 * in_bytes + 2 * 4)
    budget = int(vmem_cap * 0.45)                 # headroom for weight, sems, compiler scratch
    tm = budget // max(per_row, 1)
    tm = min(tm, 2048)                            # diminishing returns past ~8 MiB tiles
    if M > 2 * sub:
        tm = min(tm, pl.cdiv(M, 2))               # >=2 grid steps -> both v7x TCs get work
    if tm >= M:
        return M                                  # single full-extent block (any M allowed)
    return max(sub, (tm // sub) * sub)


# --------------------------------- wrapper ------------------------------------

def gemma_rmsnorm(x, weight, eps=1e-6, block_rows=None):
    """RMSNorm over the last axis of x, Gemma-style (scale = 1 + weight).

    x: (..., H); weight: (H,). Returns same shape/dtype as x.
    """
    orig_shape = x.shape
    H = orig_shape[-1]
    M = int(math.prod(orig_shape[:-1])) if len(orig_shape) > 1 else 1
    x2d = x.reshape(M, H)
    w2d = weight.reshape(1, H)

    vmem_cap = _vmem_capacity_bytes()
    tm = block_rows if block_rows is not None else _pick_block_rows(M, H, x.dtype, vmem_cap)
    tm = max(1, min(tm, M))

    in_bytes = jnp.dtype(x.dtype).itemsize
    # Double-buffered in+out tiles + f32 intermediates + weight, with 25% slack.
    working = tm * H * (4 * in_bytes + 2 * 4) + 2 * H * 4
    vmem_limit = int(min(vmem_cap * 0.85, max(working * 1.25, 32 << 20)))

    grid = (pl.cdiv(M, tm),)    # partial trailing block is masked by Pallas (per-row op)

    out = pl.pallas_call(
        functools.partial(_rmsnorm_kernel, eps=eps),
        out_shape=jax.ShapeDtypeStruct((M, H), x.dtype),
        grid=grid,
        in_specs=[
            pl.BlockSpec((tm, H), lambda i: (i, 0)),   # activation row tile
            pl.BlockSpec((1, H), lambda i: (0, 0)),    # weight, resident across steps
        ],
        out_specs=pl.BlockSpec((tm, H), lambda i: (i, 0)),
        compiler_params=pltpu.CompilerParams(
            dimension_semantics=("parallel",),
            vmem_limit_bytes=vmem_limit),
    )(x2d, w2d)

    return out.reshape(orig_shape)


# ------------------------------- JAX reference -------------------------------

def _rmsnorm_ref(x, weight, eps=1e-6):
    xf = x.astype(jnp.float32)
    normed = xf * jax.lax.rsqrt(jnp.mean(xf * xf, axis=-1, keepdims=True) + eps)
    out = normed * (1.0 + weight.astype(jnp.float32))
    return out.astype(x.dtype)


# ------------------------------------ main ------------------------------------

if __name__ == "__main__":
    key = jax.random.PRNGKey(0)
    kx, kw, kx2 = jax.random.split(key, 3)

    # Small shapes consistent with the module: (batch=2, seq=8, hidden=256).
    B, S, H = 2, 8, 256
    eps = 1e-6

    x = jax.random.normal(kx, (B, S, H), jnp.float32)
    weight = jax.random.normal(kw, (H,), jnp.float32) * 0.1

    out = gemma_rmsnorm(x, weight, eps)
    out = jax.block_until_ready(out)
    ref = _rmsnorm_ref(x, weight, eps)
    assert out.shape == x.shape and out.dtype == x.dtype
    np.testing.assert_allclose(np.asarray(out), np.asarray(ref), rtol=1e-5, atol=1e-5)

    # bf16 path (output stays bf16, matching type_as) with a ragged row count so the
    # cdiv grid produces a masked partial trailing block (no pad / no output slice).
    x_bf16 = jax.random.normal(kx2, (2, 100, H), jnp.float32).astype(jnp.bfloat16)
    out_bf16 = jax.block_until_ready(gemma_rmsnorm(x_bf16, weight, eps))
    ref_bf16 = _rmsnorm_ref(x_bf16, weight, eps)
    assert out_bf16.shape == x_bf16.shape and out_bf16.dtype == jnp.bfloat16
    np.testing.assert_allclose(np.asarray(out_bf16, dtype=np.float32),
                               np.asarray(ref_bf16, dtype=np.float32),
                               rtol=2e-2, atol=2e-2)

    print("KERNEL_OK")
</pallas_src>

<mosaic_0001>
module attributes {stable_mosaic.version = 11 : i64} {
  func.func @_rmsnorm_kernel(%arg0: i32, %arg1: memref<16x256xf32, #tpu.memory_space<vmem>>, %arg2: memref<1x256xf32, #tpu.memory_space<vmem>>, %arg3: memref<16x256xf32, #tpu.memory_space<vmem>>) attributes {dimension_semantics = [#tpu.dimension_semantics<parallel>], iteration_bounds = array<i64: 1>, scalar_prefetch = 0 : i64, scratch_operands = 0 : i64, tpu.core_type = #tpu.core_type<tc>, window_params = [{transform_indices = @transform_0, window_bounds = array<i64: 16, 256>}, {pipeline_mode = #tpu.pipeline_mode<synchronous>, transform_indices = @transform_1, window_bounds = array<i64: 1, 256>}, {transform_indices = @transform_2, window_bounds = array<i64: 16, 256>}]} {
    %c0 = arith.constant 0 : index
    %c0_0 = arith.constant 0 : index
    %0 = vector.load %arg1[%c0, %c0_0] : memref<16x256xf32, #tpu.memory_space<vmem>>, vector<16x256xf32>
    %1 = arith.mulf %0, %0 : vector<16x256xf32>
    %cst = arith.constant dense<0.000000e+00> : vector<16xf32>
    %2 = vector.multi_reduction <add>, %1, %cst [1] : vector<16x256xf32> to vector<16xf32>
    %3 = vector.shape_cast %2 : vector<16xf32> to vector<16x1xf32>
    %cst_1 = arith.constant 2.560000e+02 : f32
    %4 = vector.broadcast %cst_1 : f32 to vector<16x1xf32>
    %5 = arith.divf %3, %4 : vector<16x1xf32>
    %cst_2 = arith.constant 9.99999997E-7 : f32
    %6 = vector.broadcast %cst_2 : f32 to vector<16x1xf32>
    %7 = arith.addf %5, %6 : vector<16x1xf32>
    %8 = math.rsqrt %7 : vector<16x1xf32>
    %9 = vector.broadcast %8 : vector<16x1xf32> to vector<16x256xf32>
    %10 = arith.mulf %0, %9 : vector<16x256xf32>
    %c0_3 = arith.constant 0 : index
    %c0_4 = arith.constant 0 : index
    %11 = vector.load %arg2[%c0_3, %c0_4] : memref<1x256xf32, #tpu.memory_space<vmem>>, vector<1x256xf32>
    %cst_5 = arith.constant 1.000000e+00 : f32
    %12 = vector.broadcast %cst_5 : f32 to vector<1x256xf32>
    %13 = arith.addf %12, %11 : vector<1x256xf32>
    %14 = vector.broadcast %13 : vector<1x256xf32> to vector<16x256xf32>
    %15 = arith.mulf %10, %14 : vector<16x256xf32>
    %c0_6 = arith.constant 0 : index
    %c0_7 = arith.constant 0 : index
    %16 = vector.load %arg3[%c0_6, %c0_7] : memref<16x256xf32, #tpu.memory_space<vmem>>, vector<16x256xf32>
    tpu.vector_store %arg3[%c0_6, %c0_7], %15 {strides = array<i32>} : memref<16x256xf32, #tpu.memory_space<vmem>>, vector<16x256xf32>,
    return
  }
  func.func @transform_0(%arg0: i32) -> (i32, i32) {
    %c0_i32 = arith.constant 0 : i32
    %c0_i32_0 = arith.constant 0 : i32
    return %arg0, %c0_i32 : i32, i32
  }
  func.func @transform_1(%arg0: i32) -> (i32, i32) {
    %c0_i32 = arith.constant 0 : i32
    %c0_i32_0 = arith.constant 0 : i32
    %c0_i32_1 = arith.constant 0 : i32
    return %c0_i32, %c0_i32_0 : i32, i32
  }
  func.func @transform_2(%arg0: i32) -> (i32, i32) {
    %c0_i32 = arith.constant 0 : i32
    %c0_i32_0 = arith.constant 0 : i32
    return %arg0, %c0_i32 : i32, i32
  }
}

</mosaic_0001>

<bundles_post_ra>
// kernel: tpu_custom_call.1
= control target key start
LH: loop header
LB: loop body
LE: loop exit
PB: predicated region body
PF: predicated region fallthrough
CT: control target
= control target key end

     0   :  { %7 = vsyncpa [#allocation3], 0  ;;  %s197_s0 = inlined_call_operand.hbm [shape: f32[16,256], index: 0, kind: input, shape index: {}]   ;;  %s198_s1 = inlined_call_operand.vmem [shape: f32[1,256], index: 1, kind: input, shape index: {}]   ;;  %s199_s2 = inlined_call_operand.hbm [shape: f32[16,256], index: 2, kind: output, shape index: {}]  }
   0x1   :  { %8 = vsyncpa [#allocation4], 0  ;;  %s145_s9 = smov [#allocation2]   ;;  %s97_s13 = scalar_lea.hbm %s197_s0, 512 }
   0x2   :  { %s14_s10 = sshll.u32 %s145_s9, 4  ;;  %p98_p0 = scmp.ne.s32.totalorder %s197_s0, %s97_s13  ;;  %s15_s10 = int_to_ptr.vmem [resolvable:$true] %s14_s10 }
   0x3   :  { %p101_p1 = scmp.lt.u32.totalorder %s97_s13, %s197_s0 }
   0x5   :  { %p103_p2 = pnand %p101_p1, %p98_p0 }
   0x7   :  { %106 = shalt.err (!%p103_p2)
}
   0x8   :  { %s107_s18 = scalar_lea.vmem %s15_s10, 512  ;;  %p112_p4 = scmp.lt.s32.totalorder %s15_s10, %s15_s10 }
   0x9   :  { %p108_p3 = scmp.ne.s32.totalorder %s15_s10, %s107_s18  ;;  %p113_p5 = scmp.lt.s32.totalorder %s107_s18, %s107_s18 }
   0xb   :  { %p114_p6 = por %p113_p5, %p112_p4 }
   0xd   :  { %p115_p7 = pnand %p114_p6, %p108_p3 }
   0xf   :  { %118 = shalt.err (!%p115_p7)
}
  0x10   :  { %s146_s19 = smov 256   ;;  %s147_s20 = smov 16  }
  0x11   :  { %20 = dma.hbm_to_vmem [thread:$0]  %s197_s0, 512, %s15_s10, [#allocation3], %s146_s19, %s146_s19, %s147_s20  }
  0x12   :  { %141 = dma.done.wait [#allocation3], 512  }
  0x13   :  { %142 = vsyncadd [#allocation3], 4294966784  ;;  %v26_v0 = vld [vmem:[#allocation2] sm:$0xff]  ;;  %v27_v1 = vld [vmem:[#allocation2 + $0x8] sm:$0xff]  ;;  %v54_v12 = vlaneseq  ;;  %s148_s24 = smov [#allocation5]  }
  0x14   :  { %v28_v2 = vld [vmem:[#allocation2 + $0x10] sm:$0xff]  ;;  %v30_v3 = vmul.f32 %v26_v0, %v26_v0  ;;  %v31_v4 = vmul.f32 %v27_v1, %v27_v1  ;;  %v29_v5 = vld [vmem:[#allocation2 + $0x18] sm:$0xff]  ;;  %v51_v18 = vld [vmem:[%s198_s1] sm:$0x3]  ;;  %s77_s25 = sshll.u32 %s148_s24, 4  ;;  %s78_s25 = int_to_ptr.vmem [resolvable:$true] %s77_s25 }
  0x15   :  { %v32_v6 = vmul.f32 %v28_v2, %v28_v2  ;;  %v33_v7 = vmul.f32 %v29_v5, %v29_v5  ;;  %v55_v16 = vshrl.u32 %v54_v12, 7  ;;  %v52_v19 = vadd.f32 1.0, %v51_v18  ;;  %s119_s1 = scalar_lea.vmem %s78_s25, 512  ;;  %p124_p9 = scmp.lt.s32.totalorder %s78_s25, %s78_s25 }
  0x16   :  { %v34_v8 = vadd.f32 %v31_v4, %v30_v3  ;;  %p120_p8 = scmp.ne.s32.totalorder %s78_s25, %s119_s1  ;;  %p125_p10 = scmp.lt.s32.totalorder %s119_s1, %s119_s1 }
  0x17   :  { %v37_v9 = vadd.f32 %v33_v7, %v32_v6  ;;  %v56_v20 = vsub.s32 0, %v55_v16  ;;  %v60_v21 = vsub.s32 1, %v55_v16 }
  0x18   :  { %35 = vadd.xlane.f32.xlu0 %v34_v8  ;;  %p126_p11 = por %p125_p10, %p124_p9 }
  0x19   :  { %v57_v22 = vrot.slane %v52_v19, %v56_v20  ;;  %v61_v23 = vrot.slane %v52_v19, %v60_v21 }
  0x1a   :  { %p127_p12 = pnand %p126_p11, %p120_p8 }
  0x1c   :  { %38 = vadd.xlane.f32.xlu0 %v37_v9 }
  0xa5   :  { %v36_v10 = vpop.xlane.xlu0 %35 }
  0xa6   :  { %v41_v11 = vmul.f32 0.00390625, %v36_v10 }
  0xa8   :  { %v43_v13 = vadd.f32 1e-06, %v41_v11 }
  0xa9   :  { %v39_v14 = vpop.xlane.xlu0 %38 }
  0xaa   :  { %93 = vrsqrt.f32 %v43_v13  ;;  %v42_v15 = vmul.f32 0.00390625, %v39_v14 }
  0xac   :  { %v44_v17 = vadd.f32 1e-06, %v42_v15 }
  0xae   :  { %95 = vrsqrt.f32 %v44_v17 }
  0xb4   :  { %v94_v24 = vpop.eup %93 }
  0xb5   :  { %v47_v25 = vmul.f32 %v94_v24, %v26_v0  ;;  %v48_v26 = vmul.f32 %v94_v24, %v27_v1 }
  0xb7   :  { %v64_v27 = vmul.f32 %v57_v22, %v47_v25  ;;  %v65_v28 = vmul.f32 %v61_v23, %v48_v26 }
  0xb8   :  { %v96_v29 = vpop.eup %95 }
  0xb9   :  { %v49_v30 = vmul.f32 %v96_v29, %v28_v2  ;;  %v50_v31 = vmul.f32 %v96_v29, %v29_v5  ;;  %68 = vst [vmem:[#allocation5] sm:$0xff] %v64_v27  ;;  %69 = vst [vmem:[#allocation5 + $0x8] sm:$0xff] %v65_v28 }
  0xbb   :  { %v66_v32 = vmul.f32 %v57_v22, %v49_v30  ;;  %v67_v33 = vmul.f32 %v61_v23, %v50_v31 }
  0xbd   :  { %70 = vst [vmem:[#allocation5 + $0x10] sm:$0xff] %v66_v32  ;;  %71 = vst [vmem:[#allocation5 + $0x18] sm:$0xff] %v67_v33 }
  0xbe   :  { %130 = shalt.err (!%p127_p12)
}
  0xbf   :  { %s131_s28 = scalar_lea.hbm %s199_s2, 512 }
  0xc0   :  { %p132_p13 = scmp.ne.s32.totalorder %s199_s2, %s131_s28  ;;  %p135_p0 = scmp.lt.u32.totalorder %s131_s28, %s199_s2 }
  0xc2   :  { %p137_p1 = pnand %p135_p0, %p132_p13 }
  0xc4   :  { %140 = shalt.err (!%p137_p1)
}
  0xc5   :  { %83 = dma.vmem_to_hbm [thread:$0]  %s78_s25, 512, %s199_s2, [#allocation4], %s146_s19, %s146_s19, %s147_s20  }
  0xc6   :  { %143 = dma.done.wait [#allocation4], 512  }
  0xc7   :  { %144 = vsyncadd [#allocation4], 4294966784 }
  0xc8   :  { %87 = vsyncpa [#allocation3], 1 }
  0xc9   :  { %88 = vsyncpa [#allocation4], 1 }

</bundles_post_ra>
